<compile_context>
chip_gen: v7x
topology: tpu7x:2x2x1
jax: 0.10.0
libtpu: 0.0.40
codegen_flags: <defaults>
</compile_context>

<pallas_src>
import functools

import jax
import jax.numpy as jnp
from jax import lax
from jax.experimental import pallas as pl
from jax.experimental.pallas import tpu as pltpu


# ----------------------------------------------------------------------------
# Generation-aware sizing helpers (queried lazily, conservative fallback)
# ----------------------------------------------------------------------------
def _round_up(x, m):
    return ((x + m - 1) // m) * m


@functools.lru_cache(maxsize=1)
def _chip_params():
    """Returns (vmem_limit_bytes, tile_budget_bytes, big_vmem, num_tensorcores)."""
    cap = None
    ncores = 1
    try:
        info = pltpu.get_tpu_info()
        cap = getattr(info, "vmem_capacity_bytes", None)
        for attr in ("num_tensorcores", "tensorcore_count", "num_cores",
                     "cores_per_chip", "num_cores_per_chip", "core_count"):
            v = getattr(info, attr, None)
            if isinstance(v, int) and v > 1:
                ncores = int(v)
                break
    except Exception:
        pass
    if not cap:
        cap = 64 * 1024 * 1024               # conservative (v7x-sized) fallback
    big = cap >= 96 * 1024 * 1024            # 128-MiB-class chips (v5e/v6e)
    vmem_limit = int(min(cap * 3 // 4, 96 * 1024 * 1024))
    tile_budget = vmem_limit * 5 // 8 if big else vmem_limit // 2
    return vmem_limit, tile_budget, big, ncores


# ----------------------------------------------------------------------------
# Style loss: sum((gram(F_out) - gram(F_sty))**2), native (C, HW) layout,
# tiled (and optionally megacore-split) over the HW contraction axis.
# ----------------------------------------------------------------------------
def _gram_diff_kernel(a_ref, b_ref, out_ref, acc_ref, *, tk, hw, ragged):
    k = pl.program_id(1)                      # HW contraction tile (arbitrary)

    @pl.when(k == 0)
    def _():
        acc_ref[...] = jnp.zeros_like(acc_ref)

    fo = a_ref[...]                           # (C, tk) tile, native dtype
    fs = b_ref[...]
    if ragged:
        # mask the ragged last contraction tile instead of padding HBM
        base = (pl.program_id(0) * pl.num_programs(1) + k) * tk
        col = lax.broadcasted_iota(jnp.int32, fo.shape, 1) + base
        valid = col < hw
        fo = jnp.where(valid, fo, jnp.zeros_like(fo))
        fs = jnp.where(valid, fs, jnp.zeros_like(fs))

    # contract the HW (lane) axis of both operands; accumulate G_out - G_sty.
    dn = (((1,), (1,)), ((), ()))
    acc_ref[...] += (
        lax.dot_general(fo, fo, dn, preferred_element_type=jnp.float32)
        - lax.dot_general(fs, fs, dn, preferred_element_type=jnp.float32)
    )

    @pl.when(k == pl.num_programs(1) - 1)
    def _():
        out_ref[0] = acc_ref[...]             # (C, C) partial diff for this split


def gram_diff_sq_sum(f_out, f_sty):
    """sum((gram(f_out) - gram(f_sty))**2); f_* given native as (C, H*W)."""
    c, hw = f_out.shape
    vmem_limit, tile_budget, big, ncores = _chip_params()
    itemsize = jnp.dtype(f_out.dtype).itemsize

    # contraction tile along HW (the lane axis of the native layout)
    acc_bytes = c * c * 4
    avail = max(tile_budget - acc_bytes, 1 << 20)
    tk = avail // (4 * c * itemsize)          # 2 inputs x 2 pipeline buffers
    tk = max(128, min(tk, 16384 if big else 8192))
    tk = (tk // 128) * 128
    if tk >= hw:
        tk = hw                               # single full-extent tile
    kt = -(-hw // tk)
    ragged = (kt * tk != hw)

    # Megacore: split the contraction range across the two TensorCores (v7x)
    # so each core streams only half the features; single axis otherwise.
    # TODO(synk): consider bf16 streaming of f32 features (halves HBM traffic)
    # once the numerics impact on the scalar loss is validated.
    nsplit = 2 if (ncores >= 2 and kt % 2 == 0) else 1
    kps = kt // nsplit

    kernel = functools.partial(_gram_diff_kernel, tk=tk, hw=hw, ragged=ragged)
    partial_diff = pl.pallas_call(
        kernel,
        out_shape=jax.ShapeDtypeStruct((nsplit, c, c), jnp.float32),
        grid_spec=pltpu.PrefetchScalarGridSpec(
            num_scalar_prefetch=0,
            grid=(nsplit, kps),
            in_specs=[
                pl.BlockSpec((c, tk), lambda i, k: (0, i * kps + k)),
                pl.BlockSpec((c, tk), lambda i, k: (0, i * kps + k)),
            ],
            out_specs=pl.BlockSpec((1, c, c), lambda i, k: (i, 0, 0)),
            scratch_shapes=[pltpu.VMEM((c, c), jnp.float32)],
        ),
        compiler_params=pltpu.CompilerParams(
            dimension_semantics=("parallel", "arbitrary"),
            vmem_limit_bytes=vmem_limit,
        ),
    )(f_out, f_sty)
    diff = jnp.sum(partial_diff, axis=0)      # (C, C) = G_out - G_sty
    return jnp.sum(diff * diff)


# ----------------------------------------------------------------------------
# Content loss numerator: lane-dense tiled sum((a - b)**2), (1, lane) accumulator
# ----------------------------------------------------------------------------
def _sq_diff_kernel(a_ref, b_ref, out_ref, acc_ref):
    k = pl.program_id(0)

    @pl.when(k == 0)
    def _():
        acc_ref[...] = jnp.zeros_like(acc_ref)

    d = a_ref[...].astype(jnp.float32) - b_ref[...].astype(jnp.float32)
    acc_ref[...] += jnp.sum(d * d, axis=0, keepdims=True)   # (1, lane)

    @pl.when(k == pl.num_programs(0) - 1)
    def _():
        out_ref[...] = acc_ref[...]


def sq_diff_sum(a, b):
    vmem_limit, tile_budget, big, _ = _chip_params()
    lane = 1024 if big else 512
    af = a.reshape(-1)
    bf = b.reshape(-1)
    n = af.size
    itemsize = jnp.dtype(a.dtype).itemsize

    n_pad = _round_up(n, lane)
    rows = n_pad // lane
    per_row = lane * 4 * itemsize             # 2 inputs x 2 pipeline buffers
    cap = 2048 if big else 1024
    max_tr = max(8, min(tile_budget // per_row, cap) // 8 * 8)
    if rows <= max_tr:
        tr, rows_pad = rows, rows             # single tile (full sublane extent)
    else:
        tr = max_tr
        rows_pad = _round_up(rows, tr)

    total = rows_pad * lane
    if total != n:                            # zero padding adds 0 to the sum
        af = jnp.pad(af, (0, total - n))
        bf = jnp.pad(bf, (0, total - n))
    a2 = af.reshape(rows_pad, lane)
    b2 = bf.reshape(rows_pad, lane)

    out = pl.pallas_call(
        _sq_diff_kernel,
        out_shape=jax.ShapeDtypeStruct((1, lane), jnp.float32),
        grid_spec=pltpu.PrefetchScalarGridSpec(
            num_scalar_prefetch=0,
            grid=(rows_pad // tr,),
            in_specs=[
                pl.BlockSpec((tr, lane), lambda k: (k, 0)),
                pl.BlockSpec((tr, lane), lambda k: (k, 0)),
            ],
            out_specs=pl.BlockSpec((1, lane), lambda k: (0, 0)),
            scratch_shapes=[pltpu.VMEM((1, lane), jnp.float32)],
        ),
        compiler_params=pltpu.CompilerParams(
            dimension_semantics=("arbitrary",),
            vmem_limit_bytes=vmem_limit,
        ),
    )(a2, b2)
    return jnp.sum(out)


# ----------------------------------------------------------------------------
# Variation loss: lane-dense (N*H, W*C) layout, roll-based neighbour diffs,
# (1, wc_pad) accumulators, masks generated in-kernel and applied at finalize.
# ----------------------------------------------------------------------------
def _variation_kernel(img_ref, out_ref, accx_ref, accy_ref, *, c, w, wc, wc_pad):
    k = pl.program_id(0)

    @pl.when(k == 0)
    def _():
        accx_ref[...] = jnp.zeros_like(accx_ref)
        accy_ref[...] = jnp.zeros_like(accy_ref)

    img = img_ref[...].astype(jnp.float32)
    # neighbour along the channel axis (fastest lane): img[:, i+1] at lane i
    nxt_c = pltpu.roll(img, shift=wc_pad - 1, axis=1)
    # neighbour along the width axis (stride c in flattened lanes): img[:, i+c]
    nxt_w = pltpu.roll(img, shift=wc_pad - c, axis=1)
    dx = img - nxt_c
    dy = img - nxt_w
    accx_ref[...] += jnp.sum(dx * dx, axis=0, keepdims=True)
    accy_ref[...] += jnp.sum(dy * dy, axis=0, keepdims=True)

    @pl.when(k == pl.num_programs(0) - 1)
    def _():
        # lane-constant validity masks: applied once here (hoisted out of the
        # per-step loop); invalid-lane accumulations are finite and zeroed now.
        lane = lax.broadcasted_iota(jnp.int32, (1, wc_pad), 1)
        mx = ((lane < wc) & (lane % c != c - 1)).astype(jnp.float32)
        my = (lane < (w - 1) * c).astype(jnp.float32)
        out_ref[0:1, :] = accx_ref[...] * mx
        out_ref[1:2, :] = accy_ref[...] * my


def variation_sums(img):
    n, h, w, c = img.shape
    vmem_limit, tile_budget, big, _ = _chip_params()
    wc = w * c
    wc_pad = _round_up(wc, 128)
    rows = n * h
    itemsize = jnp.dtype(img.dtype).itemsize

    flat = img.reshape(rows, wc)
    if wc_pad != wc:                          # image is small; pad is negligible
        flat = jnp.pad(flat, ((0, 0), (0, wc_pad - wc)))

    per_row = wc_pad * 2 * itemsize           # double-buffered input tile
    cap = 2048 if big else 1024
    max_tr = max(8, min(tile_budget // per_row, cap) // 8 * 8)
    if rows <= max_tr:
        tr, rows_pad = rows, rows
    else:
        tr = max_tr
        rows_pad = _round_up(rows, tr)
    if rows_pad != rows:
        flat = jnp.pad(flat, ((0, rows_pad - rows), (0, 0)))

    kernel = functools.partial(_variation_kernel, c=c, w=w, wc=wc, wc_pad=wc_pad)
    out = pl.pallas_call(
        kernel,
        out_shape=jax.ShapeDtypeStruct((2, wc_pad), jnp.float32),
        grid_spec=pltpu.PrefetchScalarGridSpec(
            num_scalar_prefetch=0,
            grid=(rows_pad // tr,),
            in_specs=[pl.BlockSpec((tr, wc_pad), lambda k: (k, 0))],
            out_specs=pl.BlockSpec((2, wc_pad), lambda k: (0, 0)),
            scratch_shapes=[pltpu.VMEM((1, wc_pad), jnp.float32),
                            pltpu.VMEM((1, wc_pad), jnp.float32)],
        ),
        compiler_params=pltpu.CompilerParams(
            dimension_semantics=("arbitrary",),
            vmem_limit_bytes=vmem_limit,
        ),
    )(flat)
    return jnp.sum(out[0]), jnp.sum(out[1])


# ----------------------------------------------------------------------------
# TotalLoss forward (mirrors the PyTorch module semantics)
# ----------------------------------------------------------------------------
def total_loss_forward(style_output, content_output, input_img,
                       style_featmaps, content_featmaps,
                       style_layer_weights=None, content_layer_weights=None,
                       style_loss_weight=1.0, content_loss_weight=10.0,
                       variation_loss_weight=1.0):
    # --- StyleLoss ---
    style_loss = jnp.float32(0.0)
    for i in range(len(style_output)):
        _, c, h, w = style_output[i].shape
        f_out = style_output[i].reshape(c, h * w)   # free reshape, no transpose
        f_sty = style_featmaps[i].reshape(c, h * w)
        ss = gram_diff_sq_sum(f_out, f_sty)
        layer_loss = ss / jnp.float32(c * c) / jnp.float32(4.0 * (h * w) ** 2)
        if style_layer_weights is not None:
            layer_loss = layer_loss * style_layer_weights[i]
        style_loss = style_loss + layer_loss
    style_loss_val = style_loss * style_loss_weight

    # --- ContentLoss ---
    # TODO(synk): fuse the per-layer MSE pallas_calls into one accumulating call
    # (per-row layer scale) to amortize launch overhead when many small layers.
    content_loss = jnp.float32(0.0)
    for i in range(len(content_output)):
        ss = sq_diff_sum(content_output[i], content_featmaps[i])
        mse = ss / jnp.float32(content_output[i].size)
        if content_layer_weights is not None:
            mse = mse * content_layer_weights[i]
        content_loss = content_loss + mse
    content_loss_val = content_loss * content_loss_weight

    # --- VariationLoss ---  (variation_loss_weight is unused in the reference
    # forward; kept only for signature parity)
    n, h, w, c = input_img.shape
    x_sum, y_sum = variation_sums(input_img)
    x_count = n * h * w * (c - 1)
    y_count = n * h * (w - 1) * c
    variation_loss_val = jnp.sqrt(x_sum / jnp.float32(x_count)
                                  + y_sum / jnp.float32(y_count))

    total_loss_val = style_loss_val + content_loss_val + variation_loss_val
    return style_loss_val, content_loss_val, total_loss_val


# ----------------------------------------------------------------------------
# Pure-JAX reference (for verification)
# ----------------------------------------------------------------------------
def _ref_gram(f):
    _, c, h, w = f.shape
    fm = f.reshape(c, h * w)
    return fm @ fm.T


def ref_total_loss(style_output, content_output, input_img,
                   style_featmaps, content_featmaps,
                   style_loss_weight=1.0, content_loss_weight=10.0):
    sl = 0.0
    for i in range(len(style_output)):
        _, c, h, w = style_output[i].shape
        g_o = _ref_gram(style_output[i])
        g_s = _ref_gram(style_featmaps[i])
        sl = sl + jnp.mean((g_o - g_s) ** 2) / (4.0 * (h * w) ** 2)
    sl = sl * style_loss_weight
    cl = 0.0
    for i in range(len(content_output)):
        cl = cl + jnp.mean((content_output[i] - content_featmaps[i]) ** 2)
    cl = cl * content_loss_weight
    xv = input_img[:, :, :, :-1] - input_img[:, :, :, 1:]
    yv = input_img[:, :, :-1, :] - input_img[:, :, 1:, :]
    vl = jnp.sqrt(jnp.mean(xv ** 2) + jnp.mean(yv ** 2))
    return sl, cl, sl + cl + vl


# ----------------------------------------------------------------------------
if __name__ == "__main__":
    key = jax.random.PRNGKey(0)
    ks = jax.random.split(key, 9)

    # Style layers need batch=1 (PyTorch's view(c, h*w)); content layers batch=2.
    style_shapes = [(1, 8, 16, 16), (1, 16, 8, 8)]
    content_shapes = [(2, 8, 16, 16), (2, 16, 8, 8)]
    img_shape = (1, 16, 16, 4)   # (N, H, W, C) as VariationLoss indexing implies

    style_output = [jax.random.normal(ks[0], style_shapes[0], jnp.float32),
                    jax.random.normal(ks[1], style_shapes[1], jnp.float32)]
    style_featmaps = [jax.random.normal(ks[2], style_shapes[0], jnp.float32),
                      jax.random.normal(ks[3], style_shapes[1], jnp.float32)]
    content_output = [jax.random.normal(ks[4], content_shapes[0], jnp.float32),
                      jax.random.normal(ks[5], content_shapes[1], jnp.float32)]
    content_featmaps = [jax.random.normal(ks[6], content_shapes[0], jnp.float32),
                        jax.random.normal(ks[7], content_shapes[1], jnp.float32)]
    input_img = jax.random.normal(ks[8], img_shape, jnp.float32)

    s_val, c_val, t_val = total_loss_forward(
        style_output, content_output, input_img,
        style_featmaps, content_featmaps)
    jax.block_until_ready((s_val, c_val, t_val))

    rs, rc, rt = ref_total_loss(style_output, content_output, input_img,
                                style_featmaps, content_featmaps)
    assert jnp.allclose(s_val, rs, rtol=1e-4, atol=1e-5), (s_val, rs)
    assert jnp.allclose(c_val, rc, rtol=1e-4, atol=1e-5), (c_val, rc)
    assert jnp.allclose(t_val, rt, rtol=1e-4, atol=1e-5), (t_val, rt)

    print("KERNEL_OK")
</pallas_src>

<mosaic_0001>
module attributes {stable_mosaic.version = 11 : i64} {
  func.func @_gram_diff_kernel(%arg0: i32, %arg1: i32, %arg2: memref<8x256xf32, #tpu.memory_space<vmem>>, %arg3: memref<8x256xf32, #tpu.memory_space<vmem>>, %arg4: memref<1x8x8xf32, #tpu.memory_space<vmem>>, %arg5: memref<8x8xf32, #tpu.memory_space<vmem>>) attributes {dimension_semantics = [#tpu.dimension_semantics<parallel>, #tpu.dimension_semantics<arbitrary>], iteration_bounds = array<i64: 1, 1>, scalar_prefetch = 0 : i64, scratch_operands = 1 : i64, tpu.core_type = #tpu.core_type<tc>, window_params = [{transform_indices = @transform_0, window_bounds = array<i64: 8, 256>}, {transform_indices = @transform_1, window_bounds = array<i64: 8, 256>}, {transform_indices = @transform_2, window_bounds = array<i64: 1, 8, 8>}]} {
    %c0_i32 = arith.constant 0 : i32
    %0 = arith.cmpi eq, %arg1, %c0_i32 : i32
    %1 = arith.extui %0 : i1 to i32
    %c0_i32_0 = arith.constant 0 : i32
    %2 = arith.cmpi ne, %1, %c0_i32_0 : i32
    scf.if %2 {
      %cst_11 = arith.constant 0.000000e+00 : f32
      %14 = vector.broadcast %cst_11 : f32 to vector<8x8xf32>
      %c0_12 = arith.constant 0 : index
      %c0_13 = arith.constant 0 : index
      %15 = vector.load %arg5[%c0_12, %c0_13] : memref<8x8xf32, #tpu.memory_space<vmem>>, vector<8x8xf32>
      tpu.vector_store %arg5[%c0_12, %c0_13], %14 {strides = array<i32>} : memref<8x8xf32, #tpu.memory_space<vmem>>, vector<8x8xf32>,
    } else {
    }
    %c0 = arith.constant 0 : index
    %c0_1 = arith.constant 0 : index
    %3 = vector.load %arg2[%c0, %c0_1] : memref<8x256xf32, #tpu.memory_space<vmem>>, vector<8x256xf32>
    %c0_2 = arith.constant 0 : index
    %c0_3 = arith.constant 0 : index
    %4 = vector.load %arg3[%c0_2, %c0_3] : memref<8x256xf32, #tpu.memory_space<vmem>>, vector<8x256xf32>
    %c0_4 = arith.constant 0 : index
    %c0_5 = arith.constant 0 : index
    %5 = vector.load %arg5[%c0_4, %c0_5] : memref<8x8xf32, #tpu.memory_space<vmem>>, vector<8x8xf32>
    %cst = arith.constant dense<0.000000e+00> : vector<8x8xf32>
    %6 = tpu.matmul %3, %3, %cst {dimension_numbers = #tpu.dot_dimension_numbers<[1], [1], [0], [0], [0, 0, 1, 0], [], []>} : vector<8x256xf32>, vector<8x256xf32>, vector<8x8xf32> -> vector<8x8xf32>
    %cst_6 = arith.constant dense<0.000000e+00> : vector<8x8xf32>
    %7 = tpu.matmul %4, %4, %cst_6 {dimension_numbers = #tpu.dot_dimension_numbers<[1], [1], [0], [0], [0, 0, 1, 0], [], []>} : vector<8x256xf32>, vector<8x256xf32>, vector<8x8xf32> -> vector<8x8xf32>
    %8 = arith.subf %6, %7 : vector<8x8xf32>
    %9 = arith.addf %5, %8 : vector<8x8xf32>
    %c0_7 = arith.constant 0 : index
    %c0_8 = arith.constant 0 : index
    %10 = vector.load %arg5[%c0_7, %c0_8] : memref<8x8xf32, #tpu.memory_space<vmem>>, vector<8x8xf32>
    tpu.vector_store %arg5[%c0_7, %c0_8], %9 {strides = array<i32>} : memref<8x8xf32, #tpu.memory_space<vmem>>, vector<8x8xf32>,
    %c0_i32_9 = arith.constant 0 : i32
    %11 = arith.cmpi eq, %arg1, %c0_i32_9 : i32
    %12 = arith.extui %11 : i1 to i32
    %c0_i32_10 = arith.constant 0 : i32
    %13 = arith.cmpi ne, %12, %c0_i32_10 : i32
    scf.if %13 {
      %c0_11 = arith.constant 0 : index
      %c0_12 = arith.constant 0 : index
      %14 = vector.load %arg5[%c0_11, %c0_12] : memref<8x8xf32, #tpu.memory_space<vmem>>, vector<8x8xf32>
      %c0_13 = arith.constant 0 : index
      %c0_14 = arith.constant 0 : index
      %c0_15 = arith.constant 0 : index
      %15 = vector.load %arg4[%c0_13, %c0_14, %c0_15] : memref<1x8x8xf32, #tpu.memory_space<vmem>>, vector<1x8x8xf32>
      %16 = vector.shape_cast %15 : vector<1x8x8xf32> to vector<8x8xf32>
      %17 = vector.shape_cast %14 : vector<8x8xf32> to vector<1x8x8xf32>
      tpu.vector_store %arg4[%c0_13, %c0_14, %c0_15], %17 {strides = array<i32>} : memref<1x8x8xf32, #tpu.memory_space<vmem>>, vector<1x8x8xf32>,
    } else {
    }
    return
  }
  func.func @transform_0(%arg0: i32, %arg1: i32) -> (i32, i32) {
    %c1_i32 = arith.constant 1 : i32
    %0 = arith.muli %arg0, %c1_i32 : i32
    %1 = arith.addi %0, %arg1 : i32
    %c0_i32 = arith.constant 0 : i32
    %c0_i32_0 = arith.constant 0 : i32
    return %c0_i32, %1 : i32, i32
  }
  func.func @transform_1(%arg0: i32, %arg1: i32) -> (i32, i32) {
    %c1_i32 = arith.constant 1 : i32
    %0 = arith.muli %arg0, %c1_i32 : i32
    %1 = arith.addi %0, %arg1 : i32
    %c0_i32 = arith.constant 0 : i32
    %c0_i32_0 = arith.constant 0 : i32
    return %c0_i32, %1 : i32, i32
  }
  func.func @transform_2(%arg0: i32, %arg1: i32) -> (i32, i32, i32) {
    %c0_i32 = arith.constant 0 : i32
    %c0_i32_0 = arith.constant 0 : i32
    %c0_i32_1 = arith.constant 0 : i32
    return %arg0, %c0_i32, %c0_i32_0 : i32, i32, i32
  }
}

</mosaic_0001>

<bundles_post_ra>
// kernel: tpu_custom_call.1
= control target key start
LH: loop header
LB: loop body
LE: loop exit
PB: predicated region body
PF: predicated region fallthrough
CT: control target
= control target key end

     0   :  { %7 = vsyncpa [#allocation4], 0  ;;  %s355_s0 = inlined_call_operand.hbm [shape: f32[8,256], index: 0, kind: input, shape index: {}]   ;;  %s356_s1 = inlined_call_operand.hbm [shape: f32[8,256], index: 1, kind: input, shape index: {}]   ;;  %s357_s2 = inlined_call_operand.hbm [shape: f32[1,8,8], index: 2, kind: output, shape index: {}]  }
   0x1   :  { %8 = vsyncpa [#allocation7], 0 }
   0x2   :  { %9 = vsyncpa [#allocation5], 0  ;;  %s300_s9 = smov [#allocation3]   ;;  %s301_s11 = smov [#allocation6]  }
   0x3   :  { %s20_s10 = sshll.u32 %s300_s9, 4  ;;  %s34_s12 = sshll.u32 %s301_s11, 4  ;;  %s21_s10 = int_to_ptr.vmem [resolvable:$true] %s20_s10  ;;  %s35_s12 = int_to_ptr.vmem [resolvable:$true] %s34_s12 }
   0x4   :  { %s228_s15 = scalar_lea.hbm %s355_s0, 256 }
   0x5   :  { %p229_p0 = scmp.ne.s32.totalorder %s355_s0, %s228_s15  ;;  %p232_p1 = scmp.lt.u32.totalorder %s228_s15, %s355_s0 }
   0x7   :  { %p234_p2 = pnand %p232_p1, %p229_p0 }
   0x9   :  { %237 = shalt.err (!%p234_p2)
}
   0xa   :  { %s238_s20 = scalar_lea.vmem %s21_s10, 256  ;;  %p243_p4 = scmp.lt.s32.totalorder %s21_s10, %s21_s10 }
   0xb   :  { %p239_p3 = scmp.ne.s32.totalorder %s21_s10, %s238_s20  ;;  %p244_p5 = scmp.lt.s32.totalorder %s238_s20, %s238_s20 }
   0xd   :  { %p245_p6 = por %p244_p5, %p243_p4 }
   0xf   :  { %p246_p7 = pnand %p245_p6, %p239_p3 }
  0x11   :  { %249 = shalt.err (!%p246_p7)
}
  0x12   :  { %23 = dma.hbm_to_vmem [thread:$0]  %s355_s0, 256, %s21_s10, [#allocation4]  }
  0x13   :  { %s250_s25 = scalar_lea.hbm %s356_s1, 256 }
  0x14   :  { %p251_p8 = scmp.ne.s32.totalorder %s356_s1, %s250_s25  ;;  %p254_p9 = scmp.lt.u32.totalorder %s250_s25, %s356_s1 }
  0x16   :  { %p256_p10 = pnand %p254_p9, %p251_p8 }
  0x18   :  { %259 = shalt.err (!%p256_p10)
}
  0x19   :  { %s260_s30 = scalar_lea.vmem %s35_s12, 256  ;;  %p265_p12 = scmp.lt.s32.totalorder %s35_s12, %s35_s12 }
  0x1a   :  { %p261_p11 = scmp.ne.s32.totalorder %s35_s12, %s260_s30  ;;  %p266_p13 = scmp.lt.s32.totalorder %s260_s30, %s260_s30 }
  0x1c   :  { %p267_p0 = por %p266_p13, %p265_p12 }
  0x1e   :  { %p268_p1 = pnand %p267_p0, %p261_p11 }
  0x20   :  { %271 = shalt.err (!%p268_p1)
}
  0x21   :  { %37 = dma.hbm_to_vmem [thread:$0]  %s356_s1, 256, %s35_s12, [#allocation7]  }
  0x22   :  { %294 = dma.done.wait [#allocation4], 256  }
  0x23   :  { %295 = vsyncadd [#allocation4], 4294967040 }
  0x24   :  { %296 = dma.done.wait [#allocation7], 256  }
  0x25   :  { %297 = vsyncadd [#allocation7], 4294967040  ;;  %v55_v0 = vld [vmem:[#allocation3 + $0x8] sm:$0xff]  ;;  %v57_v1 = vld [vmem:[#allocation6 + $0x8] sm:$0xff]  ;;  %vm52_vm0 = vcmask 64512   ;;  %v302_v4 = vmov 0.0  }
  0x26   :  { %v54_v2 = vld [vmem:[#allocation3] sm:$0xff]  ;;  %59 = vmatprep.subr.mxu0 %v55_v0  ;;  %129 = vmatprep.subr.mxu1 %v57_v1  ;;  %v56_v3 = vld [vmem:[#allocation6] sm:$0xff]  ;;  %53 = vst.msk [vmem:[#allocation2] sm:$0xff] %vm52_vm0, %v302_v4  ;;  %s303_s1 = smov [#allocation8]  }
  0x27   :  { %60 = vmatpush1.xpose.msra.mxu0 %v54_v2  ;;  %130 = vmatpush1.xpose.msra.mxu1 %v56_v3  ;;  %s214_s4 = sshll.u32 %s303_s1, 4  ;;  %s215_s4 = int_to_ptr.vmem [resolvable:$true] %s214_s4 }
  0x28   :  { %123 = vmatprep.mubr.f32.mxu0 %v55_v0  ;;  %193 = vmatprep.mubr.f32.mxu1 %v57_v1  ;;  %s272_s5 = scalar_lea.vmem %s215_s4, 128  ;;  %p277_p3 = scmp.lt.s32.totalorder %s215_s4, %s215_s4 }
  0x29   :  { %p273_p2 = scmp.ne.s32.totalorder %s215_s4, %s272_s5  ;;  %p278_p4 = scmp.lt.s32.totalorder %s272_s5, %s272_s5 }
  0x2a   :  { %124 = vmatmul.mubr.f32.vlgmr.msra.gmra.mrb[0].mxu0 %v54_v2  ;;  %194 = vmatmul.mubr.f32.vlgmr.msra.gmra.mrb[0].mxu1 %v56_v3 }
  0x2b   :  { %p279_p5 = por %p278_p4, %p277_p3 }
  0x2d   :  { %v58_v6 = vld [vmem:[#allocation2] sm:$0xff]  ;;  %p280_p6 = pnand %p279_p5, %p273_p2 }
  0xfd   :  { %v125_v5 = vpop.f32.mrb[0].mxu0  ;;  %v195_v7 = vpop.f32.mrb[0].mxu1 }
  0xfe   :  { %v199_v8 = vsub.f32 %v125_v5, %v195_v7  ;;  %v127_v9 = vpop.f32.mrb[1].mxu0  ;;  %v197_v10 = vpop.f32.mrb[1].mxu1 }
 0x100   :  { %v200_v11 = vadd.f32 %v199_v8, %v58_v6 }
 0x102   :  { %202 = vst.msk [vmem:[#allocation2] sm:$0xff] %vm52_vm0, %v200_v11 }
 0x109   :  { %v206_v12 = vld [vmem:[#allocation2] sm:$0xff] }
 0x10a   :  { %207 = vst.msk [vmem:[#allocation8] sm:$0xff] %vm52_vm0, %v206_v12 }
 0x10b   :  { %283 = shalt.err (!%p280_p6)
}
 0x10c   :  { %s284_s8 = scalar_lea.hbm %s357_s2, 128 }
 0x10d   :  { %p285_p7 = scmp.ne.s32.totalorder %s357_s2, %s284_s8  ;;  %p288_p8 = scmp.lt.u32.totalorder %s284_s8, %s357_s2 }
 0x10f   :  { %p290_p9 = pnand %p288_p8, %p285_p7 }
 0x111   :  { %293 = shalt.err (!%p290_p9)
}
 0x112   :  { %217 = dma.vmem_to_hbm [thread:$0]  %s215_s4, 128, %s357_s2, [#allocation5]  }
 0x113   :  { %298 = dma.done.wait [#allocation5], 128  }
 0x114   :  { %299 = vsyncadd [#allocation5], 4294967168 }
 0x115   :  { %221 = vsyncpa [#allocation4], 1 }
 0x116   :  { %222 = vsyncpa [#allocation7], 1 }
 0x117   :  { %223 = vsyncpa [#allocation5], 1 }

</bundles_post_ra>
